<compile_context>
chip_gen: v5e
topology: v5e:2x2
jax: 0.10.0
libtpu: 0.0.40
codegen_flags: <defaults>
</compile_context>

<pallas_src>
import functools

import jax
import jax.numpy as jnp
from jax.experimental import pallas as pl
from jax.experimental.pallas import tpu as pltpu

LANE = 128      # TPU lane width
SUBLANE = 8     # TPU sublane width


def _round_up(x, m):
    return ((x + m - 1) // m) * m


def _vmem_budget_bytes():
    """~75% of per-core VMEM: 48 MiB on v7x, 96 MiB on v5e/v6e."""
    try:
        cap = pltpu.get_tpu_info().vmem_capacity_bytes
    except Exception:
        cap = 64 * 1024 * 1024      # conservative fallback (v7x per-TC)
    return int(cap) * 3 // 4


def mlp_generator_kernel(x_ref, w1_ref, w2_ref, w3_ref, w4_ref, b_ref, o_ref):
    """Fused 4-layer MLP on one row tile.

    x_ref : (tile_n, in_dim)   matmul dtype (fp32 or bf16)
    w*_ref: (fan_in, out_p)    matmul dtype, grid-invariant, single-buffered
    b_ref : (4, out_p)         fp32, grid-invariant, single-buffered
    o_ref : (tile_n, out_p)
    """
    cdt = w1_ref.dtype
    b = b_ref[...]                                   # (4, out_p) fp32

    h = jnp.dot(x_ref[...], w1_ref[...],
                preferred_element_type=jnp.float32) + b[0:1, :]
    h = jnp.maximum(h, 0.0)

    h = jnp.dot(h.astype(cdt), w2_ref[...],
                preferred_element_type=jnp.float32) + b[1:2, :]
    h = jnp.maximum(h, 0.0)

    h = jnp.dot(h.astype(cdt), w3_ref[...],
                preferred_element_type=jnp.float32) + b[2:3, :]
    h = jnp.maximum(h, 0.0)

    out = jnp.dot(h.astype(cdt), w4_ref[...],
                  preferred_element_type=jnp.float32) + b[3:4, :]
    o_ref[...] = out.astype(o_ref.dtype)


def mlp_generator(emb, params, *, tile_n=None, matmul_dtype=jnp.bfloat16,
                  out_dtype=jnp.float32, min_steps=2):
    """emb: (N, in_dim).  params: w1..w4 stored as (fan_in, fan_out)
    (PyTorch weight transposed), b1..b4 as (1, out_dim)."""
    N, in_dim = emb.shape
    out_dim = params["w1"].shape[1]
    out_p = _round_up(out_dim, LANE)

    x_bytes = jnp.dtype(matmul_dtype).itemsize
    o_bytes = jnp.dtype(out_dtype).itemsize
    budget = _vmem_budget_bytes()

    # --- VMEM accounting: single-buffered resident weights + fp32 biases,
    #     double-buffered streamed row tiles + live fp32 intermediates. ------
    weight_bytes = x_bytes * (in_dim * out_p + 3 * out_p * out_p) + 4 * 4 * out_p
    per_row = (2 * in_dim * x_bytes        # double-buffered input tile
               + 2 * out_p * o_bytes       # double-buffered output tile
               + 4 * out_p * 4)            # live fp32 intermediates
    avail = max(budget - weight_bytes, per_row * SUBLANE)
    tile_cap = max(SUBLANE,
                   min(1024, (avail // per_row) // SUBLANE * SUBLANE))

    N8 = _round_up(N, SUBLANE)
    if tile_n is None:
        # >=2 balanced grid steps so v7x can shard rows across both TCs,
        # and row padding stays below SUBLANE per step.
        steps = max(min_steps if N8 > SUBLANE else 1, pl.cdiv(N8, tile_cap))
        tile_n = min(tile_cap, _round_up(pl.cdiv(N8, steps), SUBLANE))
    assert tile_n % SUBLANE == 0, "row tile must be a multiple of 8 sublanes"
    N_pad = _round_up(N8, tile_n)
    grid = (N_pad // tile_n,)

    # --- wrapper-side prep (feature K dim is NOT padded; rows padded only
    #     when needed; zero padding is exact for this ReLU-MLP) --------------
    emb_c = emb.astype(matmul_dtype)
    if N_pad != N:
        emb_c = jnp.pad(emb_c, ((0, N_pad - N), (0, 0)))

    def pad_w(w, rows, cols):
        w = w.astype(matmul_dtype)
        pr, pc = rows - w.shape[0], cols - w.shape[1]
        return jnp.pad(w, ((0, pr), (0, pc))) if (pr or pc) else w

    def pad_b(b):
        b = b.astype(jnp.float32)
        pc = out_p - b.shape[1]
        return jnp.pad(b, ((0, 0), (0, pc))) if pc else b

    w1 = pad_w(params["w1"], in_dim, out_p)
    w2 = pad_w(params["w2"], out_p, out_p)
    w3 = pad_w(params["w3"], out_p, out_p)
    w4 = pad_w(params["w4"], out_p, out_p)
    biases = jnp.concatenate([pad_b(params["b1"]), pad_b(params["b2"]),
                              pad_b(params["b3"]), pad_b(params["b4"])],
                             axis=0)                          # (4, out_p) fp32

    # Grid-invariant, single-buffered resident blocks.
    def w_spec(rows, cols):
        return pl.BlockSpec((rows, cols), lambda i: (0, 0),
                            pipeline_mode=pl.Buffered(1))

    b_spec = pl.BlockSpec((4, out_p), lambda i: (0, 0),
                          pipeline_mode=pl.Buffered(1))

    flops = 2 * N_pad * (in_dim + 3 * out_p) * out_p
    bytes_accessed = (N_pad * in_dim * x_bytes                 # emb stream
                      + weight_bytes                           # weights+biases
                      + N_pad * out_p * o_bytes)               # output stream

    out_padded = pl.pallas_call(
        mlp_generator_kernel,
        out_shape=jax.ShapeDtypeStruct((N_pad, out_p), out_dtype),
        grid_spec=pl.GridSpec(
            grid=grid,
            in_specs=[
                pl.BlockSpec((tile_n, in_dim), lambda i: (i, 0)),  # emb tile
                w_spec(in_dim, out_p),                             # W1
                w_spec(out_p, out_p),                              # W2
                w_spec(out_p, out_p),                              # W3
                w_spec(out_p, out_p),                              # W4
                b_spec,                                            # b1..b4
            ],
            out_specs=pl.BlockSpec((tile_n, out_p), lambda i: (i, 0)),
        ),
        compiler_params=pltpu.CompilerParams(
            dimension_semantics=("parallel",),     # rows shard across v7x TCs
            vmem_limit_bytes=budget,               # generation-aware
        ),
        cost_estimate=pl.CostEstimate(
            flops=int(flops), transcendentals=0,
            bytes_accessed=int(bytes_accessed)),
    )(emb_c, w1, w2, w3, w4, biases)

    if N_pad == N and out_p == out_dim:
        return out_padded                      # no extra HBM slice pass
    return out_padded[:N, :out_dim]


def init_params(key, in_dim, out_dim):
    """nn.Linear default init: U(-1/sqrt(fan_in), 1/sqrt(fan_in)).
    Weights stored as (fan_in, fan_out) = PyTorch weight transposed."""
    def linear(k, fan_in, fan_out):
        kw, kb = jax.random.split(k)
        bound = 1.0 / jnp.sqrt(jnp.float32(fan_in))
        w = jax.random.uniform(kw, (fan_in, fan_out), jnp.float32, -bound, bound)
        b = jax.random.uniform(kb, (1, fan_out), jnp.float32, -bound, bound)
        return w, b

    k1, k2, k3, k4 = jax.random.split(key, 4)
    w1, b1 = linear(k1, in_dim, out_dim)
    w2, b2 = linear(k2, out_dim, out_dim)
    w3, b3 = linear(k3, out_dim, out_dim)
    w4, b4 = linear(k4, out_dim, out_dim)
    return dict(w1=w1, b1=b1, w2=w2, b2=b2, w3=w3, b3=b3, w4=w4, b4=b4)


def mlp_generator_ref(emb, p):
    h = jax.nn.relu(emb @ p["w1"] + p["b1"])
    h = jax.nn.relu(h @ p["w2"] + p["b2"])
    h = jax.nn.relu(h @ p["w3"] + p["b3"])
    return h @ p["w4"] + p["b4"]


if __name__ == "__main__":
    key = jax.random.PRNGKey(0)
    k_emb, k_par = jax.random.split(key)

    # Small graph: 64 nodes, 16-d embedding -> 32-d output.
    N, in_dim, out_dim = 64, 16, 32
    emb = jax.random.normal(k_emb, (N, in_dim), jnp.float32)
    params = init_params(k_par, in_dim, out_dim)

    ref = mlp_generator_ref(emb, params)

    # fp32 MXU path (tight tolerance).  Auto tile -> 32 rows x 2 grid steps.
    out_f32 = jax.block_until_ready(
        mlp_generator(emb, params, matmul_dtype=jnp.float32))
    assert out_f32.shape == (N, out_dim)
    assert jnp.allclose(out_f32, ref, atol=1e-5, rtol=1e-5)

    # Default path: bf16 MXU inputs, fp32 accumulation / bias / relu.
    out_bf16 = jax.block_until_ready(mlp_generator(emb, params))
    assert out_bf16.shape == (N, out_dim)
    assert jnp.allclose(out_bf16, ref, atol=5e-2, rtol=5e-2)

    print("KERNEL_OK")
</pallas_src>

<mosaic_0001>
module attributes {stable_mosaic.version = 11 : i64} {
  func.func @mlp_generator_kernel(%arg0: i32, %arg1: memref<32x16xf32, #tpu.memory_space<vmem>>, %arg2: memref<16x128xf32, #tpu.memory_space<vmem>>, %arg3: memref<128x128xf32, #tpu.memory_space<vmem>>, %arg4: memref<128x128xf32, #tpu.memory_space<vmem>>, %arg5: memref<128x128xf32, #tpu.memory_space<vmem>>, %arg6: memref<4x128xf32, #tpu.memory_space<vmem>>, %arg7: memref<32x128xf32, #tpu.memory_space<vmem>>) attributes {dimension_semantics = [#tpu.dimension_semantics<parallel>], iteration_bounds = array<i64: 2>, scalar_prefetch = 0 : i64, scratch_operands = 0 : i64, tpu.core_type = #tpu.core_type<tc>, window_params = [{transform_indices = @transform_0, window_bounds = array<i64: 32, 16>}, {pipeline_mode = #tpu.pipeline_mode<synchronous>, transform_indices = @transform_1, window_bounds = array<i64: 16, 128>}, {pipeline_mode = #tpu.pipeline_mode<synchronous>, transform_indices = @transform_2, window_bounds = array<i64: 128, 128>}, {pipeline_mode = #tpu.pipeline_mode<synchronous>, transform_indices = @transform_3, window_bounds = array<i64: 128, 128>}, {pipeline_mode = #tpu.pipeline_mode<synchronous>, transform_indices = @transform_4, window_bounds = array<i64: 128, 128>}, {pipeline_mode = #tpu.pipeline_mode<synchronous>, transform_indices = @transform_5, window_bounds = array<i64: 4, 128>}, {transform_indices = @transform_6, window_bounds = array<i64: 32, 128>}]} {
    %c0 = arith.constant 0 : index
    %c0_0 = arith.constant 0 : index
    %0 = vector.load %arg6[%c0, %c0_0] : memref<4x128xf32, #tpu.memory_space<vmem>>, vector<4x128xf32>
    %c0_1 = arith.constant 0 : index
    %c0_2 = arith.constant 0 : index
    %1 = vector.load %arg1[%c0_1, %c0_2] : memref<32x16xf32, #tpu.memory_space<vmem>>, vector<32x16xf32>
    %c0_3 = arith.constant 0 : index
    %c0_4 = arith.constant 0 : index
    %2 = vector.load %arg2[%c0_3, %c0_4] : memref<16x128xf32, #tpu.memory_space<vmem>>, vector<16x128xf32>
    %cst = arith.constant dense<0.000000e+00> : vector<32x128xf32>
    %3 = tpu.matmul %1, %2, %cst {dimension_numbers = #tpu.dot_dimension_numbers<[1], [0], [0], [1], [0, 0, 1, 1], [], []>} : vector<32x16xf32>, vector<16x128xf32>, vector<32x128xf32> -> vector<32x128xf32>
    %4 = vector.extract_strided_slice %0 {offsets = [0, 0], sizes = [1, 128], strides = [1, 1]} : vector<4x128xf32> to vector<1x128xf32>
    %5 = vector.broadcast %4 : vector<1x128xf32> to vector<32x128xf32>
    %6 = arith.addf %3, %5 : vector<32x128xf32>
    %cst_5 = arith.constant 0.000000e+00 : f32
    %7 = vector.broadcast %cst_5 : f32 to vector<32x128xf32>
    %8 = arith.maximumf %6, %7 : vector<32x128xf32>
    %c0_6 = arith.constant 0 : index
    %c0_7 = arith.constant 0 : index
    %9 = vector.load %arg3[%c0_6, %c0_7] : memref<128x128xf32, #tpu.memory_space<vmem>>, vector<128x128xf32>
    %cst_8 = arith.constant dense<0.000000e+00> : vector<32x128xf32>
    %10 = tpu.matmul %8, %9, %cst_8 {dimension_numbers = #tpu.dot_dimension_numbers<[1], [0], [0], [1], [0, 0, 1, 1], [], []>} : vector<32x128xf32>, vector<128x128xf32>, vector<32x128xf32> -> vector<32x128xf32>
    %11 = vector.extract_strided_slice %0 {offsets = [1, 0], sizes = [1, 128], strides = [1, 1]} : vector<4x128xf32> to vector<1x128xf32>
    %12 = vector.broadcast %11 : vector<1x128xf32> to vector<32x128xf32>
    %13 = arith.addf %10, %12 : vector<32x128xf32>
    %cst_9 = arith.constant 0.000000e+00 : f32
    %14 = vector.broadcast %cst_9 : f32 to vector<32x128xf32>
    %15 = arith.maximumf %13, %14 : vector<32x128xf32>
    %c0_10 = arith.constant 0 : index
    %c0_11 = arith.constant 0 : index
    %16 = vector.load %arg4[%c0_10, %c0_11] : memref<128x128xf32, #tpu.memory_space<vmem>>, vector<128x128xf32>
    %cst_12 = arith.constant dense<0.000000e+00> : vector<32x128xf32>
    %17 = tpu.matmul %15, %16, %cst_12 {dimension_numbers = #tpu.dot_dimension_numbers<[1], [0], [0], [1], [0, 0, 1, 1], [], []>} : vector<32x128xf32>, vector<128x128xf32>, vector<32x128xf32> -> vector<32x128xf32>
    %18 = vector.extract_strided_slice %0 {offsets = [2, 0], sizes = [1, 128], strides = [1, 1]} : vector<4x128xf32> to vector<1x128xf32>
    %19 = vector.broadcast %18 : vector<1x128xf32> to vector<32x128xf32>
    %20 = arith.addf %17, %19 : vector<32x128xf32>
    %cst_13 = arith.constant 0.000000e+00 : f32
    %21 = vector.broadcast %cst_13 : f32 to vector<32x128xf32>
    %22 = arith.maximumf %20, %21 : vector<32x128xf32>
    %c0_14 = arith.constant 0 : index
    %c0_15 = arith.constant 0 : index
    %23 = vector.load %arg5[%c0_14, %c0_15] : memref<128x128xf32, #tpu.memory_space<vmem>>, vector<128x128xf32>
    %cst_16 = arith.constant dense<0.000000e+00> : vector<32x128xf32>
    %24 = tpu.matmul %22, %23, %cst_16 {dimension_numbers = #tpu.dot_dimension_numbers<[1], [0], [0], [1], [0, 0, 1, 1], [], []>} : vector<32x128xf32>, vector<128x128xf32>, vector<32x128xf32> -> vector<32x128xf32>
    %25 = vector.extract_strided_slice %0 {offsets = [3, 0], sizes = [1, 128], strides = [1, 1]} : vector<4x128xf32> to vector<1x128xf32>
    %26 = vector.broadcast %25 : vector<1x128xf32> to vector<32x128xf32>
    %27 = arith.addf %24, %26 : vector<32x128xf32>
    %c0_17 = arith.constant 0 : index
    %c0_18 = arith.constant 0 : index
    %28 = vector.load %arg7[%c0_17, %c0_18] : memref<32x128xf32, #tpu.memory_space<vmem>>, vector<32x128xf32>
    tpu.vector_store %arg7[%c0_17, %c0_18], %27 {strides = array<i32>} : memref<32x128xf32, #tpu.memory_space<vmem>>, vector<32x128xf32>,
    return
  }
  func.func @transform_0(%arg0: i32) -> (i32, i32) {
    %c0_i32 = arith.constant 0 : i32
    %c0_i32_0 = arith.constant 0 : i32
    return %arg0, %c0_i32 : i32, i32
  }
  func.func @transform_1(%arg0: i32) -> (i32, i32) {
    %c0_i32 = arith.constant 0 : i32
    %c0_i32_0 = arith.constant 0 : i32
    %c0_i32_1 = arith.constant 0 : i32
    return %c0_i32, %c0_i32_0 : i32, i32
  }
  func.func @transform_2(%arg0: i32) -> (i32, i32) {
    %c0_i32 = arith.constant 0 : i32
    %c0_i32_0 = arith.constant 0 : i32
    %c0_i32_1 = arith.constant 0 : i32
    return %c0_i32, %c0_i32_0 : i32, i32
  }
  func.func @transform_3(%arg0: i32) -> (i32, i32) {
    %c0_i32 = arith.constant 0 : i32
    %c0_i32_0 = arith.constant 0 : i32
    %c0_i32_1 = arith.constant 0 : i32
    return %c0_i32, %c0_i32_0 : i32, i32
  }
  func.func @transform_4(%arg0: i32) -> (i32, i32) {
    %c0_i32 = arith.constant 0 : i32
    %c0_i32_0 = arith.constant 0 : i32
    %c0_i32_1 = arith.constant 0 : i32
    return %c0_i32, %c0_i32_0 : i32, i32
  }
  func.func @transform_5(%arg0: i32) -> (i32, i32) {
    %c0_i32 = arith.constant 0 : i32
    %c0_i32_0 = arith.constant 0 : i32
    %c0_i32_1 = arith.constant 0 : i32
    return %c0_i32, %c0_i32_0 : i32, i32
  }
  func.func @transform_6(%arg0: i32) -> (i32, i32) {
    %c0_i32 = arith.constant 0 : i32
    %c0_i32_0 = arith.constant 0 : i32
    return %arg0, %c0_i32 : i32, i32
  }
}

</mosaic_0001>

<bundles_post_ra>
// kernel: tpu_custom_call.1
= control target key start
LH: loop header
LB: loop body
LE: loop exit
PB: predicated region body
PF: predicated region fallthrough
CT: control target
= control target key end

     0   :  { %11 = vsyncpa [#allocation3], 0  ;;  %s1080_s0 = inlined_call_operand.vmem [shape: f32[64,16], index: 0, kind: input, shape index: {}]   ;;  %s1081_s1 = inlined_call_operand.vmem [shape: f32[16,128], index: 1, kind: input, shape index: {}]   ;;  %s1082_s2 = inlined_call_operand.hbm [shape: f32[128,128], index: 2, kind: input, shape index: {}]   ;;  %s1083_s3 = inlined_call_operand.hbm [shape: f32[128,128], index: 3, kind: input, shape index: {}]   ;;  %s1084_s4 = inlined_call_operand.hbm [shape: f32[128,128], index: 4, kind: input, shape index: {}]   ;;  %s1085_s5 = inlined_call_operand.vmem [shape: f32[4,128], index: 5, kind: input, shape index: {}]   ;;  %s1086_s6 = inlined_call_operand.hbm [shape: f32[64,128], index: 6, kind: output, shape index: {}]  }
   0x1   :  { %12 = vsyncpa [#allocation6], 0 }
   0x2   :  { %13 = vsyncpa [#allocation4], 0 }
   0x3   :  { %15 = vsyncpa [#allocation4 + $0x1], 0  ;;  %s933_s21 = smov 0   ;;  %s935_s22 = smov 0  }
   0x4   :  { %s937_s23 = smov 0   ;;  %s939_s24 = smov 0  }
   0x5 LB: > { %s954_s25 = sadd.s32 4294967295, %s889_s24   ;;  %s616_s26 = sadd.s32 4294967294, %s889_s24   ;;  %s889_s24 = sphi %s939_s24, %s1094_s24   ;;  %s885_s23 = sphi %s937_s23, %s1093_s23   ;;  %s881_s22 = sphi %s935_s22, %s1092_s22   ;;  %s877_s21 = sphi %s933_s21, %s1091_s21  }
   0x6   : > { %s958_s27 = sadd.s32 1, %s889_s24   ;;  %s159_s28 = sadd.s32 1, %s885_s23 }
   0x7   : > { %s156_s29 = ssub.s32 %s889_s24, %s958_s27  ;;  %p169_p0 = scmp.ne.s32.totalorder %s885_s23, %s881_s22 }
   0x8   : > { %p157_p1 = scmp.eq.s32.totalorder %s156_s29, 0  ;;  %p170_p2 = scmp.eq.s32.totalorder %s954_s25, 1 }
   0x9   : > { %p175_p3 = scmp.ne.s32.totalorder %s881_s22, %s877_s21  ;;  %p176_p4 = scmp.eq.s32.totalorder %s616_s26, 1 }
   0xa   : > { %s969_s30 = scalar_select %p157_p1, %s885_s23, %s159_s28  }
   0xb   : > { %p971_p5 = por %p170_p2, %p169_p0  ;;  %p975_p6 = por %p176_p4, %p175_p3 }
   0xc   : > { %p617_p7 = scmp.ge.s32.totalorder %s889_s24, 1  ;;  %p183_p8 = scmp.lt.s32.totalorder %s889_s24, 3 }
   0xd   : > { %p683_p9 = scmp.eq.s32.totalorder %s954_s25, 0  ;;  %s211_s12 = sshll.u32 %s1083_s3, 4  ;;  %s212_s12 = int_to_ptr.hbm [resolvable:$true] %s211_s12 }
   0xe   : > { %p982_p10 = pnand %p617_p7, %p183_p8  ;;  %s197_s15 = sshll.u32 %s1082_s2, 4  ;;  %s198_s15 = int_to_ptr.hbm [resolvable:$true] %s197_s15 }
   0xf   : > { %s891_s17 = smov [#allocation5]   ;;  %s892_s19 = smov 128  }
  0x10   : > { %p669_p11 = pneg %p982_p10  ;;  %s213_s18 = sshll.u32 %s891_s17, 4  ;;  %s214_s18 = int_to_ptr.vmem [resolvable:$true] %s213_s18 }
  0x11   : > { %s893_s20 = smov 8   ;;  %s894_s26 = smov [#allocation2]  }
  0x12   : > { %p996_p12 = pnand %p683_p9, %p669_p11  ;;  %s199_s28 = sshll.u32 %s894_s26, 4  ;;  %s200_s28 = int_to_ptr.vmem [resolvable:$true] %s199_s28 }
  0x13   : > { %s225_s11 = sshll.u32 %s1084_s4, 4  ;;  %s895_s13 = smov [#allocation7]   ;;  %s226_s11 = int_to_ptr.hbm [resolvable:$true] %s225_s11 }
  0x14   : > { %675 = dma.hbm_to_vmem [thread:$0]  (!%p996_p12), %s212_s12, 2048, %s214_s18, [#allocation6], %s892_s19, %s892_s19, %s893_s20  }
  0x15   : > { %672 = dma.hbm_to_vmem [thread:$0]  (!%p996_p12), %s198_s15, 2048, %s200_s28, [#allocation3], %s892_s19, %s892_s19, %s893_s20  }
  0x16   : > { %s227_s14 = sshll.u32 %s895_s13, 4  ;;  %255 = sbr.rel (%p982_p10) target bundleno = 595 (0x253), region = 44  ;;  %s228_s14 = int_to_ptr.vmem [resolvable:$true] %s227_s14 }
  0x17   : > { %678 = dma.hbm_to_vmem [thread:$0]  (!%p996_p12), %s226_s11, 2048, %s228_s14, [#allocation6], %s892_s19, %s892_s19, %s893_s20  }
  0x1b   : > { %864 = dma.done.wait (%p683_p9), [#allocation3], 2048  }
  0x1c   : > { %866 = vsyncadd (%p683_p9), [#allocation3], 4294965248 }
  0x1d   : > { %868 = dma.done.wait (%p683_p9), [#allocation6], 4096  }
  0x1e   : > { %870 = vsyncadd (%p683_p9), [#allocation6], 4294963200  ;;  %s627_s12 = sshll.u32 %s954_s25, 2  ;;  %v309_v0 = vld [vmem:[%s1081_s1 + $0x8] sm:$0xff]  ;;  %v308_v1 = vld [vmem:[%s1081_s1] sm:$0xff]  ;;  %vm311_vm0 = vcmask 130048  }
  0x1f   : > { %p297_p13 = scmp.lt.s32.totalorder %s627_s12, 7  ;;  %338 = vmatpush.msra.mxu0 %v309_v0  ;;  %v372_v3 = vld [vmem:[#allocation2 + $0x78] sm:$0xff]  ;;  %v371_v4 = vld [vmem:[#allocation2 + $0x70] sm:$0xff]  ;;  %v370_v5 = vld [vmem:[#allocation2 + $0x68] sm:$0xff]  ;;  %s293_s10 = sand.u32 1, %s881_s22  }
  0x20   : > { %639 = vmatpush.msra.mxu1 %v372_v3  ;;  %v369_v6 = vld [vmem:[#allocation2 + $0x60] sm:$0xff]  ;;  %v368_v8 = vld [vmem:[#allocation2 + $0x58] sm:$0xff]  ;;  %v367_v9 = vld [vmem:[#allocation2 + $0x50] sm:$0xff]  ;;  %s626_s11 = sshll.u32 %s293_s10, 5  ;;  %s638_s14 = sshll.u32 %s954_s25, 5 }
  0x21   : > { %s1096_s12 = smov (!%p297_p13, %s627_s12), 7  ;;  %339 = vmatpush.msra.mxu0 %v308_v1  ;;  %v366_v10 = vld [vmem:[#allocation2 + $0x48] sm:$0xff]  ;;  %v365_v11 = vld [vmem:[#allocation2 + $0x40] sm:$0xff]  ;;  %v364_v13 = vld [vmem:[#allocation2 + $0x38] sm:$0xff]  ;;  %s295_s13 = scalar_lea.vmem [#allocation8], %s626_s11 }
  0x22   : > { %s628_s15 = sshll.u32 %s1096_s12, 3  ;;  %640 = vmatpush.msra.mxu1 %v371_v4  ;;  %v363_v14 = vld [vmem:[#allocation2 + $0x30] sm:$0xff]  ;;  %v362_v15 = vld [vmem:[#allocation2 + $0x28] sm:$0xff]  ;;  %v361_v16 = vld [vmem:[#allocation2 + $0x20] sm:$0xff]  ;;  %s519_s16 = scalar_lea.hbm %s1086_s6, %s638_s14 }
  0x23   : > { %s1023_s17 = scalar_lea.vmem %s1080_s0, %s628_s15  ;;  %374 = vmatpush.msrb.mxu0 %v372_v3  ;;  %v360_v18 = vld [vmem:[#allocation2 + $0x18] sm:$0xff]  ;;  %v359_v19 = vld [vmem:[#allocation2 + $0x10] sm:$0xff]  ;;  %v358_v20 = vld [vmem:[#allocation2 + $0x8] sm:$0xff]  ;;  %s520_s9 = sshll.u32 %s295_s13, 4  ;;  %s521_s9 = int_to_ptr.vmem [resolvable:$true] %s520_s9 }
  0x24   : > { %v304_v2 = vld [vmem:[%s1023_s17] sm:$0xff]  ;;  %641 = vmatpush.msra.mxu1 %v370_v5  ;;  %v305_v7 = vld [vmem:[%s1023_s17 + $0x8] sm:$0xff]  ;;  %v306_v12 = vld [vmem:[%s1023_s17 + $0x10] sm:$0xff]  ;;  %s508_s18 = scalar_lea.sflag [#allocation4], %s293_s10  ;;  %s839_s28 = scalar_lea.hbm %s1086_s6, 64 }
  0x25   : > { %629 = vmatmul.msk.f32.vlgmr.msra.gmra.mxu0 %vm311_vm0, %v304_v2  ;;  %v307_v17 = vld [vmem:[%s1023_s17 + $0x18] sm:$0xff]  ;;  %v357_v21 = vld [vmem:[#allocation2] sm:$0xff]  ;;  %v421_v25 = vld [vmem:[#allocation5 + $0x70] sm:$0xff]  ;;  %s522_s17 = sshll.u32 %s519_s16, 4  ;;  %s523_s17 = int_to_ptr.hbm [resolvable:$true] %s522_s17 }
  0x26   : > { %375 = vmatpush.msrb.mxu0 %v371_v4  ;;  %642 = vmatpush.msra.mxu1 %v369_v6  ;;  %v1042_v22 = vld [vmem:[%s1085_s5] sm:$0xf]  ;;  %v422_v24 = vld [vmem:[#allocation5 + $0x78] sm:$0xff]  ;;  %v420_v26 = vld [vmem:[#allocation5 + $0x68] sm:$0xff]  ;;  %s833_s19 = sshra.s32 %s523_s17, 4  ;;  %s834_s19 = int_to_ptr.hbm [resolvable:$true] %s833_s19 }
  0x27   : > { %v310_v23 = vperm.slane %v1042_v22, 0  ;;  %424 = vmatpush.msra.mxu2 %v422_v24  ;;  %v419_v29 = vld [vmem:[#allocation5 + $0x60] sm:$0xff]  ;;  %v418_v31 = vld [vmem:[#allocation5 + $0x58] sm:$0xff]  ;;  %v417_v32 = vld [vmem:[#allocation5 + $0x50] sm:$0xff]  ;;  %v373_v52 = vperm.slane %v1042_v22, 1  ;;  %s835_s20 = scalar_lea.hbm %s834_s19, 32  ;;  %p840_p3 = scmp.lt.s32.totalorder %s834_s19, %s1086_s6 }
  0x28   : > { %376 = vmatpush.msrb.mxu0 %v370_v5  ;;  %643 = vmatpush.msra.mxu1 %v368_v8  ;;  %v416_v33 = vld [vmem:[#allocation5 + $0x48] sm:$0xff]  ;;  %v415_v36 = vld [vmem:[#allocation5 + $0x40] sm:$0xff]  ;;  %v414_v38 = vld [vmem:[#allocation5 + $0x38] sm:$0xff]  ;;  %p836_p0 = scmp.ne.s32.totalorder %s834_s19, %s835_s20  ;;  %p841_p4 = scmp.lt.s32.totalorder %s839_s28, %s835_s20 }
  0x29   : > { %425 = vmatpush.msra.mxu2 %v421_v25  ;;  %v413_v39 = vld [vmem:[#allocation5 + $0x30] sm:$0xff]  ;;  %v412_v40 = vld [vmem:[#allocation5 + $0x28] sm:$0xff]  ;;  %v411_v43 = vld [vmem:[#allocation5 + $0x20] sm:$0xff] }
  0x2a   : > { %377 = vmatpush.msrb.mxu0 %v369_v6  ;;  %644 = vmatpush.msra.mxu1 %v367_v9  ;;  %v410_v45 = vld [vmem:[#allocation5 + $0x18] sm:$0xff]  ;;  %v409_v49 = vld [vmem:[#allocation5 + $0x10] sm:$0xff]  ;;  %v408_v50 = vld [vmem:[#allocation5 + $0x8] sm:$0xff]  ;;  %p837_p1 = pnand %p836_p0, %p971_p5  ;;  %p842_p7 = por %p841_p4, %p840_p3 }
  0x2b   : > { %426 = vmatpush.msra.mxu2 %v420_v26  ;;  %v407_v51 = vld [vmem:[#allocation5] sm:$0xff]  ;;  %v472_v53 = vld [vmem:[#allocation7 + $0x78] sm:$0xff]  ;;  %v471_v54 = vld [vmem:[#allocation7 + $0x70] sm:$0xff] }
  0x2c   : > { %378 = vmatpush.msrb.mxu0 %v368_v8  ;;  %645 = vmatpush.msra.mxu1 %v366_v10  ;;  %v470_v55 = vld [vmem:[#allocation7 + $0x68] sm:$0xff]  ;;  %v469_v58 = vld [vmem:[#allocation7 + $0x60] sm:$0xff]  ;;  %v468_v60 = vld [vmem:[#allocation7 + $0x58] sm:$0xff]  ;;  %p838_p2 = pneg %p837_p1 }
  0x2d   : > { %630 = vmatmul.msk.f32.gmra.mxu0 %vm311_vm0, %v305_v7  ;;  %427 = vmatpush.msra.mxu2 %v419_v29  ;;  %v467_v61 = vld [vmem:[#allocation7 + $0x50] sm:$0xff]  ;;  %v466_v62 = vld [vmem:[#allocation7 + $0x48] sm:$0xff]  ;;  %v465_v1 = vld [vmem:[#allocation7 + $0x40] sm:$0xff] }
  0x2e   : > { %379 = vmatpush.msrb.mxu0 %v367_v9  ;;  %646 = vmatpush.msra.mxu1 %v365_v11  ;;  %v464_v3 = vld [vmem:[#allocation7 + $0x38] sm:$0xff]  ;;  %v463_v4 = vld [vmem:[#allocation7 + $0x30] sm:$0xff]  ;;  %v462_v5 = vld [vmem:[#allocation7 + $0x28] sm:$0xff]  ;;  %p843_p8 = pnand %p842_p7, %p838_p2 }
  0x2f   : > { %428 = vmatpush.msra.mxu2 %v418_v31  ;;  %474 = vmatpush.msra.mxu3 %v472_v53  ;;  %v461_v8 = vld [vmem:[#allocation7 + $0x20] sm:$0xff]  ;;  %v473_v31 = vperm.slane %v1042_v22, 3 }
  0x30   : > { %380 = vmatpush.msrb.mxu0 %v366_v10  ;;  %647 = vmatpush.msra.mxu1 %v364_v13  ;;  %v460_v10 = vld [vmem:[#allocation7 + $0x18] sm:$0xff] }
  0x31   : > { %429 = vmatpush.msra.mxu2 %v417_v32  ;;  %475 = vmatpush.msra.mxu3 %v471_v54 }
  0x32   : > { %381 = vmatpush.msrb.mxu0 %v365_v11  ;;  %648 = vmatpush.msra.mxu1 %v363_v14 }
  0x33   : > { %430 = vmatpush.msra.mxu2 %v416_v33  ;;  %476 = vmatpush.msra.mxu3 %v470_v55 }
  0x34   : > { %382 = vmatpush.msrb.mxu0 %v364_v13  ;;  %649 = vmatpush.msra.mxu1 %v362_v15 }
  0x35   : > { %631 = vmatmul.msk.f32.gmra.mxu0 %vm311_vm0, %v306_v12  ;;  %431 = vmatpush.msra.mxu2 %v415_v36 }
  0x36   : > { %383 = vmatpush.msrb.mxu0 %v363_v14  ;;  %650 = vmatpush.msra.mxu1 %v361_v16  ;;  %v459_v14 = vld [vmem:[#allocation7 + $0x10] sm:$0xff] }
  0x37   : > { %432 = vmatpush.msra.mxu2 %v414_v38  ;;  %477 = vmatpush.msra.mxu3 %v469_v58 }
  0x38   : > { %384 = vmatpush.msrb.mxu0 %v362_v15  ;;  %651 = vmatpush.msra.mxu1 %v360_v18  ;;  %v458_v15 = vld [vmem:[#allocation7 + $0x8] sm:$0xff] }
  0x39   : > { %433 = vmatpush.msra.mxu2 %v413_v39  ;;  %478 = vmatpush.msra.mxu3 %v468_v60 }
  0x3a   : > { %385 = vmatpush.msrb.mxu0 %v361_v16  ;;  %652 = vmatpush.msra.mxu1 %v359_v19  ;;  %v457_v16 = vld [vmem:[#allocation7] sm:$0xff] }
  0x3b   : > { %434 = vmatpush.msra.mxu2 %v412_v40  ;;  %479 = vmatpush.msra.mxu3 %v467_v61 }
  0x3c   : > { %386 = vmatpush.msrb.mxu0 %v360_v18  ;;  %653 = vmatpush.msra.mxu1 %v358_v20 }
  0x3d   : > { %632 = vmatmul.msk.f32.gmra.mxu0 %vm311_vm0, %v307_v17  ;;  %435 = vmatpush.msra.mxu2 %v411_v43  ;;  %v423_v17 = vperm.slane %v1042_v22, 2 }
  0x3e   : > { %387 = vmatpush.msrb.mxu0 %v359_v19  ;;  %654 = vmatpush.msra.mxu1 %v357_v21 }
  0x3f   : > { %436 = vmatpush.msra.mxu2 %v410_v45  ;;  %480 = vmatpush.msra.mxu3 %v466_v62 }
  0x40   : > { %388 = vmatpush.msrb.mxu0 %v358_v20 }
  0x41   : > { %437 = vmatpush.msra.mxu2 %v409_v49  ;;  %481 = vmatpush.msra.mxu3 %v465_v1 }
  0x42   : > { %389 = vmatpush.msrb.mxu0 %v357_v21 }
  0x43   : > { %438 = vmatpush.msra.mxu2 %v408_v50  ;;  %482 = vmatpush.msra.mxu3 %v464_v3 }
  0x45   : > { %439 = vmatpush.msra.mxu2 %v407_v51  ;;  %483 = vmatpush.msra.mxu3 %v463_v4 }
  0x47   : > { %484 = vmatpush.msra.mxu3 %v462_v5 }
  0x49   : > { %485 = vmatpush.msra.mxu3 %v461_v8 }
  0x4b   : > { %486 = vmatpush.msra.mxu3 %v460_v10 }
  0x4d   : > { %487 = vmatpush.msra.mxu3 %v459_v14 }
  0x4f   : > { %488 = vmatpush.msra.mxu3 %v458_v15 }
  0x51   : > { %489 = vmatpush.msra.mxu3 %v457_v16 }
  0xa2   : > { %v341_v27 = vpop.f32.mrf.mxu0 }
  0xa3   : > { %v342_v28 = vadd.f32 %v341_v27, %v310_v23 }
  0xa5   : > { %v353_v30 = vmax.f32 %v342_v28, 0.0 }
  0xa7   : > { %390 = vmatmul.f32.vlgmr.msrb.gmra.mxu0 %v353_v30 }
  0xaa   : > { %v344_v34 = vpop.f32.mrf.mxu0 }
  0xab   : > { %v345_v35 = vadd.f32 %v344_v34, %v310_v23 }
  0xad   : > { %v354_v37 = vmax.f32 %v345_v35, 0.0 }
  0xaf   : > { %393 = vmatmul.f32.gmra.mxu0 %v354_v37 }
  0xb2   : > { %v347_v41 = vpop.f32.mrf.mxu0 }
  0xb3   : > { %v348_v42 = vadd.f32 %v347_v41, %v310_v23 }
  0xb5   : > { %v355_v44 = vmax.f32 %v348_v42, 0.0 }
  0xb7   : > { %396 = vmatmul.f32.gmra.mxu0 %v355_v44 }
  0xba   : > { %v350_v46 = vpop.f32.mrf.mxu0 }
  0xbb   : > { %v351_v47 = vadd.f32 %v350_v46, %v310_v23 }
  0xbd   : > { %v356_v48 = vmax.f32 %v351_v47, 0.0 }
  0xbf   : > { %399 = vmatmul.f32.vlgmr.msra.gmra.mxu1 %v356_v48 }
 0x124   : > { %v391_v56 = vpop.f32.mrf.mxu0 }
 0x125   : > { %v392_v57 = vadd.f32 %v391_v56, %v373_v52 }
 0x127   : > { %v403_v59 = vmax.f32 %v392_v57, 0.0 }
 0x129   : > { %440 = vmatmul.f32.vlgmr.msra.gmra.mxu2 %v403_v59 }
 0x12c   : > { %v394_v63 = vpop.f32.mrf.mxu0 }
 0x12d   : > { %v395_v0 = vadd.f32 %v394_v63, %v373_v52 }
 0x12f   : > { %v404_v2 = vmax.f32 %v395_v0, 0.0 }
 0x131   : > { %443 = vmatmul.f32.gmra.mxu2 %v404_v2 }
 0x134   : > { %v397_v6 = vpop.f32.mrf.mxu0 }
 0x135   : > { %v398_v7 = vadd.f32 %v397_v6, %v373_v52 }
 0x137   : > { %v405_v9 = vmax.f32 %v398_v7, 0.0 }
 0x139   : > { %446 = vmatmul.f32.gmra.mxu2 %v405_v9 }
 0x13c   : > { %v400_v11 = vpop.f32.mrf.mxu1 }
 0x13d   : > { %v401_v12 = vadd.f32 %v400_v11, %v373_v52 }
 0x13f   : > { %v406_v13 = vmax.f32 %v401_v12, 0.0 }
 0x141   : > { %449 = vmatmul.f32.gmra.mxu2 %v406_v13 }
 0x1ac   : > { %v441_v18 = vpop.f32.mrf.mxu2 }
 0x1ad   : > { %v442_v19 = vadd.f32 %v441_v18, %v423_v17 }
 0x1af   : > { %v453_v20 = vmax.f32 %v442_v19, 0.0 }
 0x1b1   : > { %490 = vmatmul.f32.vlgmr.msra.gmra.mxu3 %v453_v20 }
 0x1b4   : > { %v444_v21 = vpop.f32.mrf.mxu2 }
 0x1b5   : > { %v445_v23 = vadd.f32 %v444_v21, %v423_v17 }
 0x1b7   : > { %v454_v24 = vmax.f32 %v445_v23, 0.0 }
 0x1b9   : > { %493 = vmatmul.f32.gmra.mxu3 %v454_v24 }
 0x1bc   : > { %v447_v25 = vpop.f32.mrf.mxu2 }
 0x1bd   : > { %v448_v26 = vadd.f32 %v447_v25, %v423_v17 }
 0x1bf   : > { %v455_v27 = vmax.f32 %v448_v26, 0.0 }
 0x1c1   : > { %496 = vmatmul.f32.gmra.mxu3 %v455_v27 }
 0x1c4   : > { %v450_v28 = vpop.f32.mrf.mxu2 }
 0x1c5   : > { %v451_v29 = vadd.f32 %v450_v28, %v423_v17 }
 0x1c7   : > { %v456_v30 = vmax.f32 %v451_v29, 0.0 }
 0x1c9   : > { %499 = vmatmul.f32.gmra.mxu3 %v456_v30 }
 0x234   : > { %v491_v32 = vpop.f32.mrf.mxu3 }
 0x235   : > { %v492_v33 = vadd.f32 %v491_v32, %v473_v31 }
 0x237   : > { %503 = vst [vmem:[%s295_s13] sm:$0xff] %v492_v33 }
 0x23c   : > { %v494_v34 = vpop.f32.mrf.mxu3 }
 0x23d   : > { %v495_v35 = vadd.f32 %v494_v34, %v473_v31 }
 0x23f   : > { %504 = vst [vmem:[%s295_s13 + $0x8] sm:$0xff] %v495_v35 }
 0x244   : > { %v497_v36 = vpop.f32.mrf.mxu3 }
 0x245   : > { %v498_v37 = vadd.f32 %v497_v36, %v473_v31 }
 0x247   : > { %505 = vst [vmem:[%s295_s13 + $0x10] sm:$0xff] %v498_v37 }
 0x24c   : > { %v500_v22 = vpop.f32.mrf.mxu3 }
 0x24d   : > { %v501_v38 = vadd.f32 %v500_v22, %v473_v31 }
 0x24f   : > { %506 = vst [vmem:[%s295_s13 + $0x18] sm:$0xff] %v501_v38 }
 0x250   : > { %846 = shalt.err (!%p843_p8)
}
 0x251   : > { %s896_s10 = smov 128   ;;  %s897_s13 = smov 8  }
 0x252   : > { %667 = dma.vmem_to_hbm [thread:$0]  (%p971_p5), %s521_s9, 512, %s523_s17, %s508_s18, %s896_s10, %s896_s10, %s897_s13  }
 0x253 PF: > { %p689_p9 = scmp.ge.s32.totalorder %s889_s24, 2  ;;  %s537_s14 = sand.u32 1, %s877_s21  }
 0x254   : > { %s538_s12 = scalar_lea.sflag [#allocation4], %s537_s14 }
 0x255   : > { %p680_p10 = pnand %p689_p9, %p975_p6 }
 0x257   : > { %p681_p11 = pneg %p680_p10 }
 0x259   : > { %872 = dma.done.wait (%p681_p11), %s538_s12, 512  }
 0x25a   : > { %874 = vsyncadd (%p681_p11), %s538_s12, 4294966784  ;;  %p18_p12 = scmp.ge.s32.totalorder %s958_s27, 4   ;;  %s1091_s21 = smov %s881_s22 }
 0x25b   : > { %s1092_s22 = smov %s885_s23  ;;  %s1093_s23 = smov %s969_s30 }
 0x25c   : > { %s1094_s24 = smov %s958_s27  ;;  %20 = sbr.rel (!%p18_p12) target bundleno = 5 (0x5), region = 92 }
 0x261   :  { %544 = vsyncpa [#allocation3], 1 }
 0x262   :  { %546 = vsyncpa [#allocation3 + $0x1], 1 }
 0x263   :  { %547 = vsyncpa [#allocation6], 1 }
 0x264   :  { %548 = vsyncpa [#allocation4], 1 }
 0x265   :  { %550 = vsyncpa [#allocation4 + $0x1], 1 }

</bundles_post_ra>
